<compile_context>
chip_gen: v7x
topology: tpu7x:2x2x1
jax: 0.10.0
libtpu: 0.0.40
codegen_flags: <defaults>
</compile_context>

<pallas_src>
import math

import jax
import jax.numpy as jnp
from jax.experimental import pallas as pl
from jax.experimental.pallas import tpu as pltpu


def _round_up(x, m):
    return ((x + m - 1) // m) * m


# ----------------------------------------------------------------------------
# Fast path (real TPU): noise generated in-kernel with the hardware PRNG.
# ----------------------------------------------------------------------------
def _with_noise_prng_kernel(seed_ref, x_ref, w_ref, o_ref):
    i = pl.program_id(0)
    j = pl.program_id(1)
    # Unique, deterministic stream per (row-tile, col-tile).
    pltpu.prng_seed(seed_ref[0], i, j)

    tm, tn = x_ref.shape
    half = tn // 2                               # multiple of 128 by construction

    # Draw raw bits for HALF the elements; both Box-Muller branches are used.
    bits1 = pltpu.bitcast(pltpu.prng_random_bits((tm, half)), jnp.uint32)
    bits2 = pltpu.bitcast(pltpu.prng_random_bits((tm, half)), jnp.uint32)

    # Bitcast uniforms: top 23 bits into the mantissa of 1.0f -> u in [1, 2).
    exp_one = jnp.uint32(0x3F800000)
    u1 = pltpu.bitcast((bits1 >> 9) | exp_one, jnp.float32)     # [1, 2)
    u2 = pltpu.bitcast((bits2 >> 9) | exp_one, jnp.float32)     # [1, 2)

    # (2 - u1) in (0, 1]  -> log argument strictly positive (no -inf/NaN).
    r = jnp.sqrt(-2.0 * jnp.log(2.0 - u1))
    theta = (u2 - 1.0) * jnp.float32(2.0 * math.pi)              # [0, 2*pi)
    z1 = r * jnp.cos(theta)
    z2 = r * jnp.sin(theta)

    # Per-row weight from the resident (M_pad, 1) column (no per-step DMA).
    row0 = pl.multiple_of(i * tm, 8)
    w = w_ref[pl.ds(row0, tm), :].astype(jnp.float32)            # (tm, 1)

    x = x_ref[...].astype(jnp.float32)
    o_ref[:, :half] = (x[:, :half] + w * z1).astype(o_ref.dtype)
    o_ref[:, half:] = (x[:, half:] + w * z2).astype(o_ref.dtype)


def _with_noise_tpu(x2, w_rows, seed, TM, TN, M_pad, N_pad, out_dtype):
    grid = (M_pad // TM, N_pad // TN)
    seed_arr = jnp.asarray([seed], dtype=jnp.int32)
    itemsize = jnp.dtype(out_dtype).itemsize
    cost = pl.CostEstimate(
        flops=12 * M_pad * N_pad,
        transcendentals=2 * M_pad * N_pad,        # log+sqrt+cos+sin per 2 elems
        bytes_accessed=2 * M_pad * N_pad * itemsize + 4 * M_pad,
    )
    return pl.pallas_call(
        _with_noise_prng_kernel,
        out_shape=jax.ShapeDtypeStruct((M_pad, N_pad), out_dtype),
        grid_spec=pltpu.PrefetchScalarGridSpec(
            num_scalar_prefetch=1,                # seed lands in SMEM
            grid=grid,
            in_specs=[
                pl.BlockSpec((TM, TN), lambda i, j, s: (i, j)),      # x tile
                pl.BlockSpec((M_pad, 1), lambda i, j, s: (0, 0)),    # resident weights
            ],
            out_specs=pl.BlockSpec((TM, TN), lambda i, j, s: (i, j)),
        ),
        compiler_params=pltpu.CompilerParams(
            dimension_semantics=("parallel", "parallel"),
        ),
        cost_estimate=cost,
    )(seed_arr, x2, w_rows)


# ----------------------------------------------------------------------------
# Fallback path (CPU / interpret mode): noise generated outside the kernel.
# ----------------------------------------------------------------------------
def _with_noise_add_kernel(x_ref, n_ref, w_ref, o_ref):
    o_ref[...] = (
        x_ref[...].astype(jnp.float32)
        + w_ref[...].astype(jnp.float32) * n_ref[...].astype(jnp.float32)
    ).astype(o_ref.dtype)


def _with_noise_fallback(x2, w_rows, seed, TM, TN, M_pad, N_pad, out_dtype):
    noise = jax.random.normal(
        jax.random.PRNGKey(seed), (M_pad, N_pad), dtype=jnp.float32
    ).astype(out_dtype)
    grid = (M_pad // TM, N_pad // TN)
    return pl.pallas_call(
        _with_noise_add_kernel,
        out_shape=jax.ShapeDtypeStruct((M_pad, N_pad), out_dtype),
        grid=grid,
        in_specs=[
            pl.BlockSpec((TM, TN), lambda i, j: (i, j)),
            pl.BlockSpec((TM, TN), lambda i, j: (i, j)),
            pl.BlockSpec((TM, 1), lambda i, j: (i, 0)),
        ],
        out_specs=pl.BlockSpec((TM, TN), lambda i, j: (i, j)),
    )(x2, noise, w_rows)


# ----------------------------------------------------------------------------
# Public wrapper.
# ----------------------------------------------------------------------------
def with_noise_2d(x, weights, seed, *, tile_m=256, tile_n=1024):
    """y = x + weights.reshape(1, F, 1, 1) * randn_like(x)."""
    B, F, H, W = x.shape
    weights = jnp.asarray(weights, dtype=x.dtype)
    assert weights.shape == (F,)

    M, N = B * F, H * W
    x2 = x.reshape(M, N)                                    # contiguous view
    w_rows = jnp.tile(weights, B).reshape(M, 1)             # row b*F+f -> weights[f]

    # Rows: multiple of 8 (sublane). Lanes: multiple of 256 so each Box-Muller
    # half-tile is a multiple of 128 (unmasked lane-dense stores).
    TM = min(_round_up(M, 8), _round_up(tile_m, 8))
    TN = min(_round_up(N, 256), _round_up(tile_n, 256))

    # Pad instead of collapsing to one big block: keeps the pipeline and both
    # TensorCores busy and bounds per-buffer VMEM at TM*TN*4B (~1 MiB default).
    M_pad = _round_up(M, TM)
    N_pad = _round_up(N, TN)
    if (M_pad, N_pad) != (M, N):
        x2 = jnp.pad(x2, ((0, M_pad - M), (0, N_pad - N)))
        w_rows = jnp.pad(w_rows, ((0, M_pad - M), (0, 0)))

    out = None
    if jax.devices()[0].platform == "tpu":
        try:
            out = _with_noise_tpu(x2, w_rows, seed, TM, TN, M_pad, N_pad, x.dtype)
            out = jax.block_until_ready(out)
        except Exception:
            out = None
    if out is None:
        # TODO(synk): pltpu.prng_seed / prng_random_bits have no CPU or
        # interpret-mode lowering; on non-TPU backends fall back to
        # host-generated normal noise fed into a plain elementwise kernel.
        out = _with_noise_fallback(x2, w_rows, seed, TM, TN, M_pad, N_pad, x.dtype)

    return out[:M, :N].reshape(B, F, H, W)


if __name__ == "__main__":
    B, F, H, W = 2, 4, 16, 16
    key = jax.random.PRNGKey(0)
    x = jax.random.normal(key, (B, F, H, W), dtype=jnp.float32)

    # The module initializes weights = 0.01 * ones(F); use distinct values so
    # the per-channel scaling is actually exercised.
    weights = 0.01 * (1.0 + jnp.arange(F, dtype=jnp.float32))

    y = with_noise_2d(x, weights, seed=1234)
    y = jax.block_until_ready(y)

    assert y.shape == x.shape, y.shape
    assert y.dtype == x.dtype, y.dtype

    # Statistical check: (y - x) / weights[f] should be ~ N(0, 1) per channel.
    d = (y - x) / weights.reshape(1, F, 1, 1)
    per_ch_std = jnp.std(d, axis=(0, 2, 3))       # 512 samples per channel
    assert bool(jnp.all(per_ch_std > 0.75)) and bool(jnp.all(per_ch_std < 1.25)), per_ch_std
    assert abs(float(jnp.mean(d))) < 0.2, float(jnp.mean(d))

    print("KERNEL_OK")
</pallas_src>

<mosaic_0001>
module attributes {stable_mosaic.version = 11 : i64} {
  func.func @_with_noise_add_kernel(%arg0: i32, %arg1: i32, %arg2: memref<8x256xf32, #tpu.memory_space<vmem>>, %arg3: memref<8x256xf32, #tpu.memory_space<vmem>>, %arg4: memref<8x1xf32, #tpu.memory_space<vmem>>, %arg5: memref<8x256xf32, #tpu.memory_space<vmem>>) attributes {dimension_semantics = [#tpu.dimension_semantics<arbitrary>, #tpu.dimension_semantics<arbitrary>], iteration_bounds = array<i64: 1, 1>, scalar_prefetch = 0 : i64, scratch_operands = 0 : i64, tpu.core_type = #tpu.core_type<tc>, window_params = [{transform_indices = @transform_0, window_bounds = array<i64: 8, 256>}, {transform_indices = @transform_1, window_bounds = array<i64: 8, 256>}, {transform_indices = @transform_2, window_bounds = array<i64: 8, 1>}, {transform_indices = @transform_3, window_bounds = array<i64: 8, 256>}]} {
    %c0 = arith.constant 0 : index
    %c0_0 = arith.constant 0 : index
    %0 = vector.load %arg2[%c0, %c0_0] : memref<8x256xf32, #tpu.memory_space<vmem>>, vector<8x256xf32>
    %c0_1 = arith.constant 0 : index
    %c0_2 = arith.constant 0 : index
    %1 = vector.load %arg4[%c0_1, %c0_2] : memref<8x1xf32, #tpu.memory_space<vmem>>, vector<8x1xf32>
    %c0_3 = arith.constant 0 : index
    %c0_4 = arith.constant 0 : index
    %2 = vector.load %arg3[%c0_3, %c0_4] : memref<8x256xf32, #tpu.memory_space<vmem>>, vector<8x256xf32>
    %3 = vector.broadcast %1 : vector<8x1xf32> to vector<8x256xf32>
    %4 = arith.mulf %3, %2 : vector<8x256xf32>
    %5 = arith.addf %0, %4 : vector<8x256xf32>
    %c0_5 = arith.constant 0 : index
    %c0_6 = arith.constant 0 : index
    %6 = vector.load %arg5[%c0_5, %c0_6] : memref<8x256xf32, #tpu.memory_space<vmem>>, vector<8x256xf32>
    tpu.vector_store %arg5[%c0_5, %c0_6], %5 {strides = array<i32>} : memref<8x256xf32, #tpu.memory_space<vmem>>, vector<8x256xf32>,
    return
  }
  func.func @transform_0(%arg0: i32, %arg1: i32) -> (i32, i32) {
    %c0_i32 = arith.constant 0 : i32
    return %arg0, %arg1 : i32, i32
  }
  func.func @transform_1(%arg0: i32, %arg1: i32) -> (i32, i32) {
    %c0_i32 = arith.constant 0 : i32
    return %arg0, %arg1 : i32, i32
  }
  func.func @transform_2(%arg0: i32, %arg1: i32) -> (i32, i32) {
    %c0_i32 = arith.constant 0 : i32
    %c0_i32_0 = arith.constant 0 : i32
    return %arg0, %c0_i32 : i32, i32
  }
  func.func @transform_3(%arg0: i32, %arg1: i32) -> (i32, i32) {
    %c0_i32 = arith.constant 0 : i32
    return %arg0, %arg1 : i32, i32
  }
}

</mosaic_0001>

<bundles_post_ra>
// kernel: tpu_custom_call.1
= control target key start
LH: loop header
LB: loop body
LE: loop exit
PB: predicated region body
PF: predicated region fallthrough
CT: control target
= control target key end

     0   :  { %8 = vsyncpa [#allocation3], 0  ;;  %s211_s0 = inlined_call_operand.hbm [shape: f32[8,256], index: 0, kind: input, shape index: {}]   ;;  %s212_s1 = inlined_call_operand.hbm [shape: f32[8,256], index: 1, kind: input, shape index: {}]   ;;  %s213_s2 = inlined_call_operand.vmem [shape: f32[8,1], index: 2, kind: input, shape index: {}]   ;;  %s214_s3 = inlined_call_operand.hbm [shape: f32[8,256], index: 3, kind: output, shape index: {}]  }
   0x1   :  { %9 = vsyncpa [#allocation6], 0 }
   0x2   :  { %10 = vsyncpa [#allocation4], 0  ;;  %s148_s12 = smov [#allocation2]   ;;  %s149_s14 = smov [#allocation5]  }
   0x3   :  { %s17_s13 = sshll.u32 %s148_s12, 4  ;;  %s27_s15 = sshll.u32 %s149_s14, 4  ;;  %s18_s13 = int_to_ptr.vmem [resolvable:$true] %s17_s13  ;;  %s28_s15 = int_to_ptr.vmem [resolvable:$true] %s27_s15 }
   0x4   :  { %s76_s18 = scalar_lea.hbm %s211_s0, 256 }
   0x5   :  { %p77_p0 = scmp.ne.s32.totalorder %s211_s0, %s76_s18  ;;  %p80_p1 = scmp.lt.u32.totalorder %s76_s18, %s211_s0 }
   0x7   :  { %p82_p2 = pnand %p80_p1, %p77_p0 }
   0x9   :  { %85 = shalt.err (!%p82_p2)
}
   0xa   :  { %s86_s23 = scalar_lea.vmem %s18_s13, 256  ;;  %p91_p4 = scmp.lt.s32.totalorder %s18_s13, %s18_s13 }
   0xb   :  { %p87_p3 = scmp.ne.s32.totalorder %s18_s13, %s86_s23  ;;  %p92_p5 = scmp.lt.s32.totalorder %s86_s23, %s86_s23 }
   0xd   :  { %p93_p6 = por %p92_p5, %p91_p4 }
   0xf   :  { %p94_p7 = pnand %p93_p6, %p87_p3 }
  0x11   :  { %97 = shalt.err (!%p94_p7)
}
  0x12   :  { %20 = dma.hbm_to_vmem [thread:$0]  %s211_s0, 256, %s18_s13, [#allocation3]  }
  0x13   :  { %s98_s28 = scalar_lea.hbm %s212_s1, 256 }
  0x14   :  { %p99_p8 = scmp.ne.s32.totalorder %s212_s1, %s98_s28  ;;  %p102_p9 = scmp.lt.u32.totalorder %s98_s28, %s212_s1 }
  0x16   :  { %p104_p10 = pnand %p102_p9, %p99_p8 }
  0x18   :  { %107 = shalt.err (!%p104_p10)
}
  0x19   :  { %s108_s6 = scalar_lea.vmem %s28_s15, 256  ;;  %p113_p12 = scmp.lt.s32.totalorder %s28_s15, %s28_s15 }
  0x1a   :  { %p109_p11 = scmp.ne.s32.totalorder %s28_s15, %s108_s6  ;;  %p114_p13 = scmp.lt.s32.totalorder %s108_s6, %s108_s6 }
  0x1c   :  { %p115_p0 = por %p114_p13, %p113_p12 }
  0x1e   :  { %p116_p1 = pnand %p115_p0, %p109_p11 }
  0x20   :  { %119 = shalt.err (!%p116_p1)
}
  0x21   :  { %30 = dma.hbm_to_vmem [thread:$0]  %s212_s1, 256, %s28_s15, [#allocation6]  }
  0x22   :  { %142 = dma.done.wait [#allocation3], 256  }
  0x23   :  { %143 = vsyncadd [#allocation3], 4294967040 }
  0x24   :  { %144 = dma.done.wait [#allocation6], 256  }
  0x25   :  { %145 = vsyncadd [#allocation6], 4294967040  ;;  %v150_v0 = vmov 0   ;;  %v41_v1 = vld [vmem:[%s213_s2] sm:$0xff]  ;;  %v42_v2 = vld [vmem:[#allocation5] sm:$0xff]  ;;  %s151_s10 = smov [#allocation7]  }
  0x26   :  { %75 = vset.pattern.permute.xlu0 %v150_v0  ;;  %v43_v3 = vld [vmem:[#allocation5 + $0x8] sm:$0xff]  ;;  %v39_v5 = vld [vmem:[#allocation2] sm:$0xff]  ;;  %v40_v6 = vld [vmem:[#allocation2 + $0x8] sm:$0xff]  ;;  %s61_s11 = sshll.u32 %s151_s10, 4  ;;  %s62_s11 = int_to_ptr.vmem [resolvable:$true] %s61_s11 }
  0x27   :  { %46 = vperm.xlu0 %75, %v41_v1   ;;  %s120_s1 = scalar_lea.vmem %s62_s11, 256  ;;  %p125_p3 = scmp.lt.s32.totalorder %s62_s11, %s62_s11 }
  0x28   :  { %p121_p2 = scmp.ne.s32.totalorder %s62_s11, %s120_s1  ;;  %p126_p4 = scmp.lt.s32.totalorder %s120_s1, %s120_s1 }
  0x2a   :  { %p127_p5 = por %p126_p4, %p125_p3 }
  0x2c   :  { %p128_p6 = pnand %p127_p5, %p121_p2 }
  0xa6   :  { %v47_v4 = vpop.permute.xlu0 %46 }
  0xa7   :  { %v49_v7 = vmul.f32 %v47_v4, %v42_v2  ;;  %v50_v8 = vmul.f32 %v47_v4, %v43_v3 }
  0xa9   :  { %v51_v9 = vadd.f32 %v49_v7, %v39_v5  ;;  %v52_v10 = vadd.f32 %v50_v8, %v40_v6 }
  0xab   :  { %53 = vst [vmem:[#allocation7] sm:$0xff] %v51_v9  ;;  %54 = vst [vmem:[#allocation7 + $0x8] sm:$0xff] %v52_v10 }
  0xac   :  { %131 = shalt.err (!%p128_p6)
}
  0xad   :  { %s132_s13 = scalar_lea.hbm %s214_s3, 256 }
  0xae   :  { %p133_p7 = scmp.ne.s32.totalorder %s214_s3, %s132_s13  ;;  %p136_p8 = scmp.lt.u32.totalorder %s132_s13, %s214_s3 }
  0xb0   :  { %p138_p9 = pnand %p136_p8, %p133_p7 }
  0xb2   :  { %141 = shalt.err (!%p138_p9)
}
  0xb3   :  { %64 = dma.vmem_to_hbm [thread:$0]  %s62_s11, 256, %s214_s3, [#allocation4]  }
  0xb4   :  { %146 = dma.done.wait [#allocation4], 256  }
  0xb5   :  { %147 = vsyncadd [#allocation4], 4294967040 }
  0xb6   :  { %68 = vsyncpa [#allocation3], 1 }
  0xb7   :  { %69 = vsyncpa [#allocation6], 1 }
  0xb8   :  { %70 = vsyncpa [#allocation4], 1 }

</bundles_post_ra>
